<compile_context>
chip_gen: v7x
topology: tpu7x:2x2x1
jax: 0.10.0
libtpu: 0.0.40
codegen_flags: <defaults>
</compile_context>

<pallas_src>
import jax
import jax.numpy as jnp
from jax.experimental import pallas as pl
from jax.experimental.pallas import tpu as pltpu


def _round_up(n, m):
    return ((n + m - 1) // m) * m


def _sig(z):
    # One EUP push (tanh) per element instead of exp + divide.
    return 0.5 * jnp.tanh(0.5 * z) + 0.5


# ----------------------------- Pallas kernel --------------------------------
def _make_kernel(K):
    """Kernel factory; K (knowledge dim) is a compile-time constant.

    Packed input lane layout (f32, width padded to a multiple of 128):
      [0 : K)          input_knowledge_point
      [K : K+1)        e_difficulty logit (pre-sigmoid)
      [K+1 : K+1+P)    ability_emb(stu_id)          (only feeds the merged matmul)
      [K+1+P : 1+P+2K) k_difficulty(input_exercise) (only feeds the merged matmul)
      rest             zero padding
    """

    def kernel(packed_ref,            # (TB, PACK_W) packed per-row inputs
               wcat_ref, bcat_ref,    # (PACK_W, 2K), (1, 2K) merged fc1/fc2
               pn1_w_ref, pn1_b_ref,  # (K, 512) bf16 |W|, (1, 512) f32
               pn2_w_ref, pn2_b_ref,  # (512, 256) bf16 |W|, (1, 256) f32
               pn3_w_ref, pn3_b_ref,  # (1, 256) f32 |W| row, (1, 1) f32
               out_ref):              # (1, 1, TB)
        packed = packed_ref[...]                                      # (TB, PACK_W)

        # Merged fc1/fc2: block-diagonal weight selects the ability / kdiff
        # lanes; one MXU call, one sigmoid over 2K lanes.
        s = _sig(jnp.dot(packed, wcat_ref[...],
                         preferred_element_type=jnp.float32) + bcat_ref[...])  # (TB, 2K)
        diff = s[:, :K] - s[:, K:2 * K]                               # com_sta - com_kd

        e_diff = _sig(packed[:, K:K + 1])                             # (TB, 1)
        kp = packed[:, :K]                                            # (TB, K)
        x = e_diff * diff * kp                                        # (TB, K) f32

        # prednet PosLinears (|W| pre-applied, bf16 weights, f32 accumulate).
        h1 = _sig(jnp.dot(x.astype(jnp.bfloat16), pn1_w_ref[...],
                          preferred_element_type=jnp.float32) + pn1_b_ref[...])
        h2 = _sig(jnp.dot(h1.astype(jnp.bfloat16), pn2_w_ref[...],
                          preferred_element_type=jnp.float32) + pn2_b_ref[...])

        # Final PosLinear (out_features=1): VPU multiply + lane reduce, then a
        # lane-dense (1, TB) row store (no masked column stores).
        red = jnp.sum(h2 * pn3_w_ref[...], axis=-1)                   # (TB,)
        logits = red[None, :] + pn3_b_ref[...]                        # (1, TB)
        out_ref[...] = _sig(logits)[None]                             # (1, 1, TB)

    return kernel


# ------------------------------- Wrapper -------------------------------------
def target_net2_pallas(ability, kdiff, elogit, kp, new_exer, params, *, tb_max=1024):
    B, P = ability.shape
    K = kdiff.shape[1]

    # --- batch-independent algebraic folds (exact; done once, outside kernel) ---
    fc1_eff_wT = params["fc1a_wT"] + params["gen_wT"] @ params["fc1b_wT"]   # (P, K)
    fc1_eff_b = params["fc1_b"] + params["gen_b"] @ params["fc1b_wT"]       # (1, K)
    fc2_eff_b = params["fc2_b"] + new_exer @ params["fc2a_wT"]              # (1, K)
    pn1_abs = jnp.abs(params["pn1_wT"]).astype(jnp.bfloat16)                # (K, 512)
    pn2_abs = jnp.abs(params["pn2_wT"]).astype(jnp.bfloat16)                # (512, 256)
    pn3_abs_row = jnp.abs(params["pn3_wT"]).reshape(1, -1)                  # (1, 256)

    # --- packed lane-dense input stream + merged block-diagonal fc weight ---
    PACK_W = _round_up(1 + P + 2 * K, 128)
    AB0 = K + 1          # ability lane start
    KD0 = K + 1 + P      # k_difficulty lane start
    wcat = jnp.zeros((PACK_W, 2 * K), jnp.float32)
    wcat = wcat.at[AB0:AB0 + P, :K].set(fc1_eff_wT)
    wcat = wcat.at[KD0:KD0 + K, K:2 * K].set(params["fc2b_wT"])
    bcat = jnp.concatenate([fc1_eff_b, fc2_eff_b], axis=1)                  # (1, 2K)

    # --- batch tile selection: minimize padding, even tile count when B is big ---
    desired_tiles = max(pl.cdiv(B, tb_max), 2 if B >= 32 else 1)
    if desired_tiles > 1 and desired_tiles % 2:
        desired_tiles += 1           # even split across the two v7x TensorCores
    TB = _round_up(pl.cdiv(B, desired_tiles), 8)
    Bp = _round_up(B, TB)
    num_tiles = Bp // TB

    packed = jnp.concatenate([kp, elogit, ability, kdiff], axis=1)          # (B, 1+P+2K)
    packed = jnp.pad(packed, ((0, Bp - B), (0, PACK_W - packed.shape[1])))  # (Bp, PACK_W)

    def const_spec(shape):
        nd = len(shape)
        return pl.BlockSpec(shape, lambda i, _nd=nd: (0,) * _nd)

    weights = (wcat, bcat,
               pn1_abs, params["pn1_b"],
               pn2_abs, params["pn2_b"],
               pn3_abs_row, params["pn3_b"])

    out = pl.pallas_call(
        _make_kernel(K),
        out_shape=jax.ShapeDtypeStruct((num_tiles, 1, TB), jnp.float32),
        grid=(num_tiles,),
        in_specs=[pl.BlockSpec((TB, PACK_W), lambda i: (i, 0))]
                 + [const_spec(w.shape) for w in weights],
        out_specs=pl.BlockSpec((1, 1, TB), lambda i: (i, 0, 0)),
        compiler_params=pltpu.CompilerParams(
            dimension_semantics=("parallel",),
            vmem_limit_bytes=32 * 1024 * 1024),   # covers v5e's 16 MiB scoped default
    )(packed, *weights)

    return out.reshape(Bp)[:B]   # matches output_1.view(-1)


# ----------------------------- Parameter setup -------------------------------
def make_params(key, pp_dim, knowledge_n, exer_n, student_n, n_ranges):
    P, K = pp_dim, knowledge_n
    ks = jax.random.split(key, 32)

    def xavier(k, fan_out, fan_in):
        std = (2.0 / (fan_in + fan_out)) ** 0.5
        return std * jax.random.normal(k, (fan_out, fan_in), jnp.float32)

    p = {}
    # embeddings
    p["ability_table"] = xavier(ks[0], student_n, P)
    p["kdiff_table"] = xavier(ks[1], exer_n, K)
    p["ediff_table"] = xavier(ks[2], exer_n, 1)
    # generalize_layer_stu : Linear(P -> K)
    p["gen_wT"] = xavier(ks[3], K, P).T
    p["gen_b"] = jnp.zeros((1, K), jnp.float32)
    # fc1 : Linear(P+K -> K), split along input into (P) and (K) halves
    w_fc1 = xavier(ks[4], K, P + K)
    p["fc1a_wT"] = w_fc1[:, :P].T
    p["fc1b_wT"] = w_fc1[:, P:].T
    p["fc1_b"] = jnp.zeros((1, K), jnp.float32)
    # fc2 : Linear(P+K -> K)
    w_fc2 = xavier(ks[5], K, P + K)
    p["fc2a_wT"] = w_fc2[:, :P].T
    p["fc2b_wT"] = w_fc2[:, P:].T
    p["fc2_b"] = jnp.zeros((1, K), jnp.float32)
    # prednet PosLinears
    p["pn1_wT"] = xavier(ks[6], 512, K).T
    p["pn1_b"] = jnp.zeros((1, 512), jnp.float32)
    p["pn2_wT"] = xavier(ks[7], 256, 512).T
    p["pn2_b"] = jnp.zeros((1, 256), jnp.float32)
    p["pn3_wT"] = xavier(ks[8], 1, 256).T
    p["pn3_b"] = jnp.zeros((1, 1), jnp.float32)
    # Transform_Exr: len(s_ranges) learned vectors + SimpleMLP(P*S -> 10 -> P)
    p["s_exer_vectors"] = jax.random.uniform(ks[9], (n_ranges, P), jnp.float32)
    p["mlp_w1"] = xavier(ks[10], 10, P * n_ranges)
    p["mlp_b1"] = jnp.zeros((10,), jnp.float32)
    p["mlp_w2"] = xavier(ks[11], P, 10)
    p["mlp_b2"] = jnp.zeros((P,), jnp.float32)
    return p


def transform_exr_const_vector(p):
    # Batch-independent constant: computed once in plain JAX (glue), tiny MLP.
    ev = p["s_exer_vectors"].reshape(1, -1)                     # (1, P*S)
    h = jax.nn.relu(ev @ p["mlp_w1"].T + p["mlp_b1"])
    return h @ p["mlp_w2"].T + p["mlp_b2"]                      # (1, P)


# ----------------------------- Pure-JAX reference ----------------------------
def target_net2_ref(ability, kdiff, elogit, kp, new_exer, p):
    stu_emb = ability @ p["gen_wT"] + p["gen_b"]
    com_sta = jax.nn.sigmoid(ability @ p["fc1a_wT"] + stu_emb @ p["fc1b_wT"] + p["fc1_b"])
    com_kd = jax.nn.sigmoid(new_exer @ p["fc2a_wT"] + kdiff @ p["fc2b_wT"] + p["fc2_b"])
    x = jax.nn.sigmoid(elogit) * (com_sta - com_kd) * kp
    h1 = jax.nn.sigmoid(x @ jnp.abs(p["pn1_wT"]) + p["pn1_b"])
    h2 = jax.nn.sigmoid(h1 @ jnp.abs(p["pn2_wT"]) + p["pn2_b"])
    return jax.nn.sigmoid(h2 @ jnp.abs(p["pn3_wT"]) + p["pn3_b"]).reshape(-1)


# ----------------------------------- Main ------------------------------------
if __name__ == "__main__":
    pp_dim = 16
    knowledge_n = 32
    train_knowledge_n = 24          # unused in forward (kept for interface parity)
    exer_n = 20
    student_n = 10
    s_ranges = [(0, 5), (5, 10)]    # only len(s_ranges) matters
    B = 8

    key = jax.random.PRNGKey(0)
    kp_key, ks, ke, kkp = jax.random.split(key, 4)
    params = make_params(kp_key, pp_dim, knowledge_n, exer_n, student_n, len(s_ranges))

    stu_id = jax.random.randint(ks, (B,), 0, student_n)
    input_exercise = jax.random.randint(ke, (B,), 0, exer_n)
    input_knowledge_point = (
        jax.random.uniform(kkp, (B, knowledge_n)) > 0.5).astype(jnp.float32)

    # Embedding gathers + Transform_Exr constant (glue).
    # TODO(synk): gathers could be fused via PrefetchScalarGridSpec + pl.Element
    # row-gather specs, but that forces 1-row blocks; kept as XLA gathers.
    ability_x = jnp.take(params["ability_table"], stu_id, axis=0)            # (B, P)
    k_difficulty = jnp.take(params["kdiff_table"], input_exercise, axis=0)   # (B, K)
    e_logit = jnp.take(params["ediff_table"], input_exercise, axis=0)        # (B, 1)
    new_exer = transform_exr_const_vector(params)                            # (1, P)

    out = target_net2_pallas(ability_x, k_difficulty, e_logit,
                             input_knowledge_point, new_exer, params)
    out = jax.block_until_ready(out)

    ref = target_net2_ref(ability_x, k_difficulty, e_logit,
                          input_knowledge_point, new_exer, params)
    assert out.shape == (B,)
    # bf16 prednet matmuls -> relaxed tolerance vs. the f32 reference.
    assert jnp.allclose(out, ref, atol=5e-3, rtol=5e-3)
    print("KERNEL_OK")
</pallas_src>

<mosaic_0001>
module attributes {stable_mosaic.version = 11 : i64} {
  func.func @kernel(%arg0: i32, %arg1: memref<8x128xf32, #tpu.memory_space<vmem>>, %arg2: memref<128x64xf32, #tpu.memory_space<vmem>>, %arg3: memref<1x64xf32, #tpu.memory_space<vmem>>, %arg4: memref<32x512xbf16, #tpu.memory_space<vmem>>, %arg5: memref<1x512xf32, #tpu.memory_space<vmem>>, %arg6: memref<512x256xbf16, #tpu.memory_space<vmem>>, %arg7: memref<1x256xf32, #tpu.memory_space<vmem>>, %arg8: memref<1x256xf32, #tpu.memory_space<vmem>>, %arg9: memref<1x1xf32, #tpu.memory_space<vmem>>, %arg10: memref<1x1x8xf32, #tpu.memory_space<vmem>>) attributes {dimension_semantics = [#tpu.dimension_semantics<parallel>], iteration_bounds = array<i64: 1>, scalar_prefetch = 0 : i64, scratch_operands = 0 : i64, tpu.core_type = #tpu.core_type<tc>, window_params = [{transform_indices = @transform_0, window_bounds = array<i64: 8, 128>}, {pipeline_mode = #tpu.pipeline_mode<synchronous>, transform_indices = @transform_1, window_bounds = array<i64: 128, 64>}, {pipeline_mode = #tpu.pipeline_mode<synchronous>, transform_indices = @transform_2, window_bounds = array<i64: 1, 64>}, {pipeline_mode = #tpu.pipeline_mode<synchronous>, transform_indices = @transform_3, window_bounds = array<i64: 32, 512>}, {pipeline_mode = #tpu.pipeline_mode<synchronous>, transform_indices = @transform_4, window_bounds = array<i64: 1, 512>}, {pipeline_mode = #tpu.pipeline_mode<synchronous>, transform_indices = @transform_5, window_bounds = array<i64: 512, 256>}, {pipeline_mode = #tpu.pipeline_mode<synchronous>, transform_indices = @transform_6, window_bounds = array<i64: 1, 256>}, {pipeline_mode = #tpu.pipeline_mode<synchronous>, transform_indices = @transform_7, window_bounds = array<i64: 1, 256>}, {pipeline_mode = #tpu.pipeline_mode<synchronous>, transform_indices = @transform_8, window_bounds = array<i64: 1, 1>}, {transform_indices = @transform_9, window_bounds = array<i64: 1, 1, 8>}]} {
    %c0 = arith.constant 0 : index
    %c0_0 = arith.constant 0 : index
    %0 = vector.load %arg1[%c0, %c0_0] : memref<8x128xf32, #tpu.memory_space<vmem>>, vector<8x128xf32>
    %c0_1 = arith.constant 0 : index
    %c0_2 = arith.constant 0 : index
    %1 = vector.load %arg2[%c0_1, %c0_2] : memref<128x64xf32, #tpu.memory_space<vmem>>, vector<128x64xf32>
    %cst = arith.constant dense<0.000000e+00> : vector<8x64xf32>
    %2 = tpu.matmul %0, %1, %cst {dimension_numbers = #tpu.dot_dimension_numbers<[1], [0], [0], [1], [0, 0, 1, 1], [], []>} : vector<8x128xf32>, vector<128x64xf32>, vector<8x64xf32> -> vector<8x64xf32>
    %c0_3 = arith.constant 0 : index
    %c0_4 = arith.constant 0 : index
    %3 = vector.load %arg3[%c0_3, %c0_4] : memref<1x64xf32, #tpu.memory_space<vmem>>, vector<1x64xf32>
    %4 = vector.broadcast %3 : vector<1x64xf32> to vector<8x64xf32>
    %5 = arith.addf %2, %4 : vector<8x64xf32>
    %cst_5 = arith.constant 5.000000e-01 : f32
    %6 = vector.broadcast %cst_5 : f32 to vector<8x64xf32>
    %7 = arith.mulf %6, %5 : vector<8x64xf32>
    %8 = math.tanh %7 : vector<8x64xf32>
    %cst_6 = arith.constant 5.000000e-01 : f32
    %9 = vector.broadcast %cst_6 : f32 to vector<8x64xf32>
    %10 = arith.mulf %9, %8 : vector<8x64xf32>
    %cst_7 = arith.constant 5.000000e-01 : f32
    %11 = vector.broadcast %cst_7 : f32 to vector<8x64xf32>
    %12 = arith.addf %10, %11 : vector<8x64xf32>
    %13 = vector.extract_strided_slice %12 {offsets = [0, 0], sizes = [8, 32], strides = [1, 1]} : vector<8x64xf32> to vector<8x32xf32>
    %14 = vector.extract_strided_slice %12 {offsets = [0, 32], sizes = [8, 32], strides = [1, 1]} : vector<8x64xf32> to vector<8x32xf32>
    %15 = arith.subf %13, %14 : vector<8x32xf32>
    %16 = vector.extract_strided_slice %0 {offsets = [0, 32], sizes = [8, 1], strides = [1, 1]} : vector<8x128xf32> to vector<8x1xf32>
    %cst_8 = arith.constant 5.000000e-01 : f32
    %17 = vector.broadcast %cst_8 : f32 to vector<8x1xf32>
    %18 = arith.mulf %17, %16 : vector<8x1xf32>
    %19 = math.tanh %18 : vector<8x1xf32>
    %cst_9 = arith.constant 5.000000e-01 : f32
    %20 = vector.broadcast %cst_9 : f32 to vector<8x1xf32>
    %21 = arith.mulf %20, %19 : vector<8x1xf32>
    %cst_10 = arith.constant 5.000000e-01 : f32
    %22 = vector.broadcast %cst_10 : f32 to vector<8x1xf32>
    %23 = arith.addf %21, %22 : vector<8x1xf32>
    %24 = vector.extract_strided_slice %0 {offsets = [0, 0], sizes = [8, 32], strides = [1, 1]} : vector<8x128xf32> to vector<8x32xf32>
    %25 = vector.broadcast %23 : vector<8x1xf32> to vector<8x32xf32>
    %26 = arith.mulf %25, %15 : vector<8x32xf32>
    %27 = arith.mulf %26, %24 : vector<8x32xf32>
    %28 = arith.truncf %27 : vector<8x32xf32> to vector<8x32xbf16>
    %c0_11 = arith.constant 0 : index
    %c0_12 = arith.constant 0 : index
    %29 = vector.load %arg4[%c0_11, %c0_12] : memref<32x512xbf16, #tpu.memory_space<vmem>>, vector<32x512xbf16>
    %cst_13 = arith.constant dense<0.000000e+00> : vector<8x512xf32>
    %30 = tpu.matmul %28, %29, %cst_13 {dimension_numbers = #tpu.dot_dimension_numbers<[1], [0], [0], [1], [0, 0, 1, 1], [], []>} : vector<8x32xbf16>, vector<32x512xbf16>, vector<8x512xf32> -> vector<8x512xf32>
    %c0_14 = arith.constant 0 : index
    %c0_15 = arith.constant 0 : index
    %31 = vector.load %arg5[%c0_14, %c0_15] : memref<1x512xf32, #tpu.memory_space<vmem>>, vector<1x512xf32>
    %32 = vector.broadcast %31 : vector<1x512xf32> to vector<8x512xf32>
    %33 = arith.addf %30, %32 : vector<8x512xf32>
    %cst_16 = arith.constant 5.000000e-01 : f32
    %34 = vector.broadcast %cst_16 : f32 to vector<8x512xf32>
    %35 = arith.mulf %34, %33 : vector<8x512xf32>
    %36 = math.tanh %35 : vector<8x512xf32>
    %cst_17 = arith.constant 5.000000e-01 : f32
    %37 = vector.broadcast %cst_17 : f32 to vector<8x512xf32>
    %38 = arith.mulf %37, %36 : vector<8x512xf32>
    %cst_18 = arith.constant 5.000000e-01 : f32
    %39 = vector.broadcast %cst_18 : f32 to vector<8x512xf32>
    %40 = arith.addf %38, %39 : vector<8x512xf32>
    %41 = arith.truncf %40 : vector<8x512xf32> to vector<8x512xbf16>
    %c0_19 = arith.constant 0 : index
    %c0_20 = arith.constant 0 : index
    %42 = vector.load %arg6[%c0_19, %c0_20] : memref<512x256xbf16, #tpu.memory_space<vmem>>, vector<512x256xbf16>
    %cst_21 = arith.constant dense<0.000000e+00> : vector<8x256xf32>
    %43 = tpu.matmul %41, %42, %cst_21 {dimension_numbers = #tpu.dot_dimension_numbers<[1], [0], [0], [1], [0, 0, 1, 1], [], []>} : vector<8x512xbf16>, vector<512x256xbf16>, vector<8x256xf32> -> vector<8x256xf32>
    %c0_22 = arith.constant 0 : index
    %c0_23 = arith.constant 0 : index
    %44 = vector.load %arg7[%c0_22, %c0_23] : memref<1x256xf32, #tpu.memory_space<vmem>>, vector<1x256xf32>
    %45 = vector.broadcast %44 : vector<1x256xf32> to vector<8x256xf32>
    %46 = arith.addf %43, %45 : vector<8x256xf32>
    %cst_24 = arith.constant 5.000000e-01 : f32
    %47 = vector.broadcast %cst_24 : f32 to vector<8x256xf32>
    %48 = arith.mulf %47, %46 : vector<8x256xf32>
    %49 = math.tanh %48 : vector<8x256xf32>
    %cst_25 = arith.constant 5.000000e-01 : f32
    %50 = vector.broadcast %cst_25 : f32 to vector<8x256xf32>
    %51 = arith.mulf %50, %49 : vector<8x256xf32>
    %cst_26 = arith.constant 5.000000e-01 : f32
    %52 = vector.broadcast %cst_26 : f32 to vector<8x256xf32>
    %53 = arith.addf %51, %52 : vector<8x256xf32>
    %c0_27 = arith.constant 0 : index
    %c0_28 = arith.constant 0 : index
    %54 = vector.load %arg8[%c0_27, %c0_28] : memref<1x256xf32, #tpu.memory_space<vmem>>, vector<1x256xf32>
    %55 = vector.broadcast %54 : vector<1x256xf32> to vector<8x256xf32>
    %56 = arith.mulf %53, %55 : vector<8x256xf32>
    %cst_29 = arith.constant dense<0.000000e+00> : vector<8xf32>
    %57 = vector.multi_reduction <add>, %56, %cst_29 [1] : vector<8x256xf32> to vector<8xf32>
    %58 = vector.shape_cast %57 : vector<8xf32> to vector<1x8xf32>
    %c0_30 = arith.constant 0 : index
    %c0_31 = arith.constant 0 : index
    %59 = vector.load %arg9[%c0_30, %c0_31] : memref<1x1xf32, #tpu.memory_space<vmem>>, vector<1x1xf32>
    %60 = vector.broadcast %59 : vector<1x1xf32> to vector<1x8xf32>
    %61 = arith.addf %58, %60 : vector<1x8xf32>
    %cst_32 = arith.constant 5.000000e-01 : f32
    %62 = vector.broadcast %cst_32 : f32 to vector<1x8xf32>
    %63 = arith.mulf %62, %61 : vector<1x8xf32>
    %64 = math.tanh %63 : vector<1x8xf32>
    %cst_33 = arith.constant 5.000000e-01 : f32
    %65 = vector.broadcast %cst_33 : f32 to vector<1x8xf32>
    %66 = arith.mulf %65, %64 : vector<1x8xf32>
    %cst_34 = arith.constant 5.000000e-01 : f32
    %67 = vector.broadcast %cst_34 : f32 to vector<1x8xf32>
    %68 = arith.addf %66, %67 : vector<1x8xf32>
    %69 = vector.shape_cast %68 : vector<1x8xf32> to vector<1x1x8xf32>
    %c0_35 = arith.constant 0 : index
    %c0_36 = arith.constant 0 : index
    %c0_37 = arith.constant 0 : index
    %70 = vector.load %arg10[%c0_35, %c0_36, %c0_37] : memref<1x1x8xf32, #tpu.memory_space<vmem>>, vector<1x1x8xf32>
    tpu.vector_store %arg10[%c0_35, %c0_36, %c0_37], %69 {strides = array<i32>} : memref<1x1x8xf32, #tpu.memory_space<vmem>>, vector<1x1x8xf32>,
    return
  }
  func.func @transform_0(%arg0: i32) -> (i32, i32) {
    %c0_i32 = arith.constant 0 : i32
    %c0_i32_0 = arith.constant 0 : i32
    return %arg0, %c0_i32 : i32, i32
  }
  func.func @transform_1(%arg0: i32) -> (i32, i32) {
    %c0_i32 = arith.constant 0 : i32
    %c0_i32_0 = arith.constant 0 : i32
    %c0_i32_1 = arith.constant 0 : i32
    return %c0_i32, %c0_i32_0 : i32, i32
  }
  func.func @transform_2(%arg0: i32) -> (i32, i32) {
    %c0_i32 = arith.constant 0 : i32
    %c0_i32_0 = arith.constant 0 : i32
    %c0_i32_1 = arith.constant 0 : i32
    return %c0_i32, %c0_i32_0 : i32, i32
  }
  func.func @transform_3(%arg0: i32) -> (i32, i32) {
    %c0_i32 = arith.constant 0 : i32
    %c0_i32_0 = arith.constant 0 : i32
    %c0_i32_1 = arith.constant 0 : i32
    return %c0_i32, %c0_i32_0 : i32, i32
  }
  func.func @transform_4(%arg0: i32) -> (i32, i32) {
    %c0_i32 = arith.constant 0 : i32
    %c0_i32_0 = arith.constant 0 : i32
    %c0_i32_1 = arith.constant 0 : i32
    return %c0_i32, %c0_i32_0 : i32, i32
  }
  func.func @transform_5(%arg0: i32) -> (i32, i32) {
    %c0_i32 = arith.constant 0 : i32
    %c0_i32_0 = arith.constant 0 : i32
    %c0_i32_1 = arith.constant 0 : i32
    return %c0_i32, %c0_i32_0 : i32, i32
  }
  func.func @transform_6(%arg0: i32) -> (i32, i32) {
    %c0_i32 = arith.constant 0 : i32
    %c0_i32_0 = arith.constant 0 : i32
    %c0_i32_1 = arith.constant 0 : i32
    return %c0_i32, %c0_i32_0 : i32, i32
  }
  func.func @transform_7(%arg0: i32) -> (i32, i32) {
    %c0_i32 = arith.constant 0 : i32
    %c0_i32_0 = arith.constant 0 : i32
    %c0_i32_1 = arith.constant 0 : i32
    return %c0_i32, %c0_i32_0 : i32, i32
  }
  func.func @transform_8(%arg0: i32) -> (i32, i32) {
    %c0_i32 = arith.constant 0 : i32
    %c0_i32_0 = arith.constant 0 : i32
    %c0_i32_1 = arith.constant 0 : i32
    return %c0_i32, %c0_i32_0 : i32, i32
  }
  func.func @transform_9(%arg0: i32) -> (i32, i32, i32) {
    %c0_i32 = arith.constant 0 : i32
    %c0_i32_0 = arith.constant 0 : i32
    %c0_i32_1 = arith.constant 0 : i32
    return %arg0, %c0_i32, %c0_i32_0 : i32, i32, i32
  }
}

</mosaic_0001>

<bundles_post_ra>
// kernel: tpu_custom_call.1
= control target key start
LH: loop header
LB: loop body
LE: loop exit
PB: predicated region body
PF: predicated region fallthrough
CT: control target
= control target key end

     0   :  { %s1425_s0 = inlined_call_operand.vmem [shape: f32[8,128], index: 0, kind: input, shape index: {}]   ;;  %s1426_s1 = inlined_call_operand.vmem [shape: f32[128,64], index: 1, kind: input, shape index: {}]   ;;  %s1427_s2 = inlined_call_operand.vmem [shape: f32[1,64], index: 2, kind: input, shape index: {}]   ;;  %s1428_s3 = inlined_call_operand.vmem [shape: bf16[32,512], index: 3, kind: input, shape index: {}]   ;;  %s1429_s4 = inlined_call_operand.vmem [shape: f32[1,512], index: 4, kind: input, shape index: {}]   ;;  %s1430_s5 = inlined_call_operand.hbm [shape: bf16[512,256], index: 5, kind: input, shape index: {}]   ;;  %s1431_s6 = inlined_call_operand.vmem [shape: f32[1,256], index: 6, kind: input, shape index: {}]   ;;  %s1432_s7 = inlined_call_operand.vmem [shape: f32[1,256], index: 7, kind: input, shape index: {}]   ;;  %s1433_s8 = inlined_call_operand.<no memory space> [shape: f32[1,1], index: 8, kind: input, shape index: {}]   ;;  %s1434_s9 = inlined_call_operand.hbm [shape: f32[1,1,8], index: 9, kind: output, shape index: {}]  }
   0x1   :  { %v14_v0 = vstv %s1433_s8 }
   0x2   :  { %15 = vst [vmem:[#allocation2] sm:$0x1] %v14_v0 }
   0x3   :  { %16 = vsyncpa [#allocation4], 0 }
   0x4   :  { %17 = vsyncpa [#allocation5], 0  ;;  %s1226_s11 = smov [#allocation3]   ;;  %s1178_s15 = scalar_lea.hbm %s1430_s5, 8192 }
   0x5   :  { %s33_s12 = sshll.u32 %s1226_s11, 4  ;;  %p1179_p0 = scmp.ne.s32.totalorder %s1430_s5, %s1178_s15  ;;  %s34_s12 = int_to_ptr.vmem [resolvable:$true] %s33_s12 }
   0x6   :  { %p1182_p1 = scmp.lt.u32.totalorder %s1178_s15, %s1430_s5 }
   0x8   :  { %p1184_p2 = pnand %p1182_p1, %p1179_p0 }
   0xa   :  { %1187 = shalt.err (!%p1184_p2)
}
   0xb   :  { %s1188_s8 = scalar_lea.vmem %s34_s12, 8192  ;;  %p1193_p4 = scmp.lt.s32.totalorder %s34_s12, %s34_s12 }
   0xc   :  { %p1189_p3 = scmp.ne.s32.totalorder %s34_s12, %s1188_s8  ;;  %p1194_p5 = scmp.lt.s32.totalorder %s1188_s8, %s1188_s8 }
   0xe   :  { %p1195_p6 = por %p1194_p5, %p1193_p4 }
  0x10   :  { %p1196_p7 = pnand %p1195_p6, %p1189_p3 }
  0x12   :  { %1199 = shalt.err (!%p1196_p7)
}
  0x13   :  { %s1227_s20 = smov 128   ;;  %s1228_s21 = smov 8  }
  0x14   :  { %39 = dma.hbm_to_vmem [thread:$0]  %s1430_s5, 8192, %s34_s12, [#allocation4], %s1227_s20, %s1227_s20, %s1228_s21  }
  0x15   :  { %1222 = dma.done.wait [#allocation4], 8192  }
  0x16   :  { %1223 = vsyncadd [#allocation4], 4294959104  ;;  %v1229_v1 = vmov 0.0|0.0   ;;  %vm1230_vm0 = vmmov 0   ;;  %v1231_v2 = vmov 0.0   ;;  %v51_v3 = vld [vmem:[%s1426_s1] sm:$0xff] }
  0x17   :  { %1011 = vmatprep.subr.bf16.mxu0 %v1229_v1  ;;  %1008 = vmatprep.mubr.msk.f32.mxu0 %vm1230_vm0, %v1231_v2  ;;  %v52_v4 = vld [vmem:[%s1426_s1 + $0x8] sm:$0xff]  ;;  %v53_v5 = vld [vmem:[%s1426_s1 + $0x10] sm:$0xff]  ;;  %v54_v7 = vld [vmem:[%s1426_s1 + $0x18] sm:$0xff]  ;;  %v1232_v32 = vmov 32   ;;  %v1233_v43 = vmov 0   ;;  %s1234_s21 = smov 96  }
  0x18   :  { %v1012_v6 = vpack.c.bf16 %v52_v4, %v51_v3  ;;  %v1015_v8 = vpack.c.bf16 %v54_v7, %v53_v5  ;;  %v55_v9 = vld [vmem:[%s1426_s1 + $0x20] sm:$0xff]  ;;  %v56_v10 = vld [vmem:[%s1426_s1 + $0x28] sm:$0xff]  ;;  %v57_v11 = vld [vmem:[%s1426_s1 + $0x30] sm:$0xff]  ;;  %1049 = vset.pattern.permute.xlu0 %v1232_v32  ;;  %271 = vmatprep.mubr.bf16.mxu1 %v1233_v43  ;;  %vm235_vm1 = vcmask 261120   ;;  %vm867_vm2 = vcmask 57344  }
  0x19   :  { %v58_v12 = vld [vmem:[%s1426_s1 + $0x38] sm:$0xff]  ;;  %v1018_v13 = vpack.c.bf16 %v56_v10, %v55_v9  ;;  %v59_v14 = vld [vmem:[%s1426_s1 + $0x40] sm:$0xff]  ;;  %v60_v15 = vld [vmem:[%s1426_s1 + $0x48] sm:$0xff]  ;;  %1050 = vset.pattern.permute.xlu1 %v1233_v43 }
  0x1a   :  { %1013 = vmatpush3.bf16.msra.mxu0 %v1012_v6  ;;  %v1021_v16 = vpack.c.bf16 %v58_v12, %v57_v11  ;;  %v61_v17 = vld [vmem:[%s1426_s1 + $0x50] sm:$0xff]  ;;  %v62_v18 = vld [vmem:[%s1426_s1 + $0x58] sm:$0xff]  ;;  %v1024_v19 = vpack.c.bf16 %v60_v15, %v59_v14  ;;  %v63_v20 = vld [vmem:[%s1426_s1 + $0x60] sm:$0xff] }
  0x1b   :  { %1014 = vmatprep.subr.bf16.mxu0 %v1229_v1  ;;  %v64_v21 = vld [vmem:[%s1426_s1 + $0x68] sm:$0xff]  ;;  %v1027_v22 = vpack.c.bf16 %v62_v18, %v61_v17  ;;  %v65_v23 = vld [vmem:[%s1426_s1 + $0x70] sm:$0xff]  ;;  %v66_v24 = vld [vmem:[%s1426_s1 + $0x78] sm:$0xff] }
  0x1c   :  { %v1030_v25 = vpack.c.bf16 %v64_v21, %v63_v20  ;;  %v1033_v26 = vpack.c.bf16 %v66_v24, %v65_v23  ;;  %v1352_v27 = vld [vmem:[%s1425_s0] sm:$0xff]  ;;  %v1060_v42 = vld [vmem:[%s1428_s3 + $0xc] ss:$16 sps:$4 sm:$0xff]   ;;  %v1061_v11 = vld [vmem:[%s1428_s3 + $0x28] ss:$16 sps:$4 sm:$0xff]  }
  0x1d   :  { %v153_v28 = vmul.f32 0.5, %v1352_v27  ;;  %v1052_v33 = vld [vmem:[%s1428_s3 + $0x4] ss:$16 sps:$4 sm:$0xff]   ;;  %v884_v34 = vld [vmem:[%s1427_s2] ss:$0 sm:$0xff] }
  0x1e   :  { %1016 = vmatpush3.bf16.msra.mxu0 %v1015_v8  ;;  %239 = vmatprep.subr.bf16.mxu1 %v1052_v33  ;;  %v1054_v39 = vld [vmem:[%s1428_s3] ss:$16 sps:$4 sm:$0xff]   ;;  %v1055_v40 = vld [vmem:[%s1428_s3 + $0x24] ss:$16 sps:$4 sm:$0xff]   ;;  %v1058_v8 = vld [vmem:[%s1428_s3 + $0x8] ss:$16 sps:$4 sm:$0xff]  }
  0x1f   :  { %1017 = vmatprep.subr.bf16.mxu0 %v1229_v1  ;;  %1160 = vtanh.f32 %v153_v28  ;;  %240 = vmatpush1.bf16.msra.mxu1 %v1054_v39  ;;  %v1057_v41 = vld [vmem:[%s1428_s3 + $0x20] ss:$16 sps:$4 sm:$0xff]   ;;  %v1063_v10 = vld [vmem:[%s1428_s3 + $0x2c] ss:$16 sps:$4 sm:$0xff]  }
  0x20   :  { %241 = vmatprep.subr.bf16.mxu1 %v1055_v40  ;;  %v1064_v47 = vld [vmem:[#allocation3] ss:$8 sps:$4 sm:$0xff]   ;;  %v1066_v48 = vld [vmem:[#allocation3 + $0x4] ss:$8 sps:$4 sm:$0xff]   ;;  %v1069_v49 = vld [vmem:[#allocation3 + $0x14] ss:$8 sps:$4 sm:$0xff]  }
  0x21   :  { %v1067_v50 = vld [vmem:[#allocation3 + $0x10] ss:$8 sps:$4 sm:$0xff]   ;;  %v1072_v51 = vld [vmem:[#allocation3 + $0x24] ss:$8 sps:$4 sm:$0xff]   ;;  %v1070_v52 = vld [vmem:[#allocation3 + $0x20] ss:$8 sps:$4 sm:$0xff]  }
  0x22   :  { %1019 = vmatpush3.bf16.msra.mxu0 %v1018_v13  ;;  %v1078_v53 = vld [vmem:[#allocation3 + $0x34] ss:$8 sps:$4 sm:$0xff]   ;;  %v1076_v54 = vld [vmem:[#allocation3 + $0x30] ss:$8 sps:$4 sm:$0xff]   ;;  %v1084_v55 = vld [vmem:[#allocation3 + $0x44] ss:$8 sps:$4 sm:$0xff]  }
  0x23   :  { %1020 = vmatprep.subr.bf16.mxu0 %v1229_v1  ;;  %242 = vmatpush1.bf16.msra.mxu1 %v1057_v41  ;;  %v1082_v56 = vld [vmem:[#allocation3 + $0x40] ss:$8 sps:$4 sm:$0xff]   ;;  %v1090_v57 = vld [vmem:[#allocation3 + $0x54] ss:$8 sps:$4 sm:$0xff]   ;;  %v1088_v58 = vld [vmem:[#allocation3 + $0x50] ss:$8 sps:$4 sm:$0xff]  }
  0x24   :  { %280 = vmatprep.subr.bf16.mxu1 %v1060_v42  ;;  %v1096_v59 = vld [vmem:[#allocation3 + $0x64] ss:$8 sps:$4 sm:$0xff]   ;;  %v1094_v60 = vld [vmem:[#allocation3 + $0x60] ss:$8 sps:$4 sm:$0xff]   ;;  %v1102_v61 = vld [vmem:[#allocation3 + $0x74] ss:$8 sps:$4 sm:$0xff]  }
  0x25   :  { %v1100_v62 = vld [vmem:[#allocation3 + $0x70] ss:$8 sps:$4 sm:$0xff]   ;;  %v1108_v63 = vld [vmem:[#allocation3 + $0x84] ss:$8 sps:$4 sm:$0xff]   ;;  %v1106_v0 = vld [vmem:[#allocation3 + $0x80] ss:$8 sps:$4 sm:$0xff]  }
  0x26   :  { %1022 = vmatpush3.bf16.msra.mxu0 %v1021_v16  ;;  %v1112_v2 = vld [vmem:[#allocation3 + $0x90] ss:$8 sps:$4 sm:$0xff]   ;;  %v1075_v12 = vld [vmem:[#allocation3 + $0x104] ss:$8 sps:$4 sm:$0xff]   ;;  %v1073_v13 = vld [vmem:[#allocation3 + $0x100] ss:$8 sps:$4 sm:$0xff]  }
  0x27   :  { %1023 = vmatprep.subr.bf16.mxu0 %v1229_v1  ;;  %v1081_v14 = vld [vmem:[#allocation3 + $0x114] ss:$8 sps:$4 sm:$0xff]   ;;  %v1079_v15 = vld [vmem:[#allocation3 + $0x110] ss:$8 sps:$4 sm:$0xff]   ;;  %v1087_v16 = vld [vmem:[#allocation3 + $0x124] ss:$8 sps:$4 sm:$0xff]  }
  0x28   :  { %v1085_v17 = vld [vmem:[#allocation3 + $0x120] ss:$8 sps:$4 sm:$0xff]   ;;  %v1093_v18 = vld [vmem:[#allocation3 + $0x134] ss:$8 sps:$4 sm:$0xff]   ;;  %v1099_v20 = vld [vmem:[#allocation3 + $0x144] ss:$8 sps:$4 sm:$0xff]  }
  0x29   :  { %v1161_v29 = vpop.eup %1160  ;;  %v1097_v21 = vld [vmem:[#allocation3 + $0x140] ss:$8 sps:$4 sm:$0xff]   ;;  %v1103_v23 = vld [vmem:[#allocation3 + $0x150] ss:$8 sps:$4 sm:$0xff]   ;;  %v1111_v24 = vld [vmem:[#allocation3 + $0x164] ss:$8 sps:$4 sm:$0xff]  }
  0x2a   :  { %1025 = vmatpush3.bf16.msra.mxu0 %v1024_v19  ;;  %v155_v30 = vmul.f32 0.5, %v1161_v29  ;;  %v1091_v19 = vld [vmem:[#allocation3 + $0x130] ss:$8 sps:$4 sm:$0xff]   ;;  %v1120_v28 = vld [vmem:[#allocation3 + $0xa4] ss:$8 sps:$4 sm:$0xff]  }
  0x2b   :  { %1026 = vmatprep.subr.bf16.mxu0 %v1229_v1  ;;  %v1123_v29 = vld [vmem:[#allocation3 + $0x184] ss:$8 sps:$4 sm:$0xff]   ;;  %v1126_v32 = vld [vmem:[#allocation3 + $0xb4] ss:$8 sps:$4 sm:$0xff]   ;;  %v1133_v39 = vld [vmem:[#allocation3 + $0x1a0] ss:$8 sps:$4 sm:$0xff]  }
  0x2c   :  { %v156_v31 = vadd.f32 0.5, %v155_v30  ;;  %v1118_v30 = vld [vmem:[#allocation3 + $0xa0] ss:$8 sps:$4 sm:$0xff]   ;;  %v1129_v33 = vld [vmem:[#allocation3 + $0x194] ss:$8 sps:$4 sm:$0xff]  }
  0x2d   :  { %v1138_v40 = vld [vmem:[#allocation3 + $0xd4] ss:$8 sps:$4 sm:$0xff]   ;;  %v1136_v42 = vld [vmem:[#allocation3 + $0xd0] ss:$8 sps:$4 sm:$0xff]  }
  0x2e   :  { %1028 = vmatpush3.bf16.msra.mxu0 %v1027_v22  ;;  %159 = vperm.xlu0 %1049, %v156_v31   ;;  %v1105_v22 = vld [vmem:[#allocation3 + $0x154] ss:$8 sps:$4 sm:$0xff]   ;;  %v1121_v31 = vld [vmem:[#allocation3 + $0x180] ss:$8 sps:$4 sm:$0xff]  }
  0x2f   :  { %1029 = vmatprep.subr.bf16.mxu0 %v1229_v1  ;;  %v1141_v41 = vld [vmem:[#allocation3 + $0x1b4] ss:$8 sps:$4 sm:$0xff]  }
  0x32   :  { %1031 = vmatpush3.bf16.msra.mxu0 %v1030_v25  ;;  %1051 = vset.pattern.permute.xlu0 %v1233_v43  ;;  %v1109_v25 = vld [vmem:[#allocation3 + $0x160] ss:$8 sps:$4 sm:$0xff]  }
  0x33   :  { %1032 = vmatprep.subr.bf16.mxu0 %v1229_v1  ;;  %v1114_v1 = vld [vmem:[#allocation3 + $0x94] ss:$8 sps:$4 sm:$0xff]  }
  0x36   :  { %1034 = vmatpush3.bf16.msra.mxu0 %v1033_v26  ;;  %v1117_v26 = vld [vmem:[#allocation3 + $0x174] ss:$8 sps:$4 sm:$0xff]  }
  0x37   :  { %737 = vmatprep.subr.bf16.mxu0 %v1066_v48  ;;  %v1150_v48 = vld [vmem:[#allocation3 + $0xf4] ss:$8 sps:$4 sm:$0xff]  }
  0x39   :  { %1009 = vmatmul.mubr.f32.vlgmr.msra.gmra.mrb[0].mxu0 %v1352_v27 }
  0x3a   :  { %738 = vmatpush1.bf16.msra.mxu0 %v1064_v47  ;;  %v1145_v47 = vld [vmem:[#allocation3 + $0x1c0] ss:$8 sps:$4 sm:$0xff]  }
  0x3b   :  { %739 = vmatprep.subr.bf16.mxu0 %v1069_v49  ;;  %v1153_v49 = vld [vmem:[#allocation3 + $0x1d4] ss:$8 sps:$4 sm:$0xff]  }
  0x3e   :  { %740 = vmatpush1.bf16.msra.mxu0 %v1067_v50  ;;  %v1148_v50 = vld [vmem:[#allocation3 + $0xf0] ss:$8 sps:$4 sm:$0xff]  }
  0x3f   :  { %741 = vmatprep.subr.bf16.mxu0 %v1072_v51  ;;  %v1151_v51 = vld [vmem:[#allocation3 + $0x1d0] ss:$8 sps:$4 sm:$0xff]  }
  0x42   :  { %742 = vmatpush1.bf16.msra.mxu0 %v1070_v52  ;;  %v1156_v52 = vld [vmem:[#allocation3 + $0x1e4] ss:$8 sps:$4 sm:$0xff]  }
  0x43   :  { %743 = vmatprep.subr.bf16.mxu0 %v1078_v53  ;;  %v1154_v53 = vld [vmem:[#allocation3 + $0x1e0] ss:$8 sps:$4 sm:$0xff]  }
  0x46   :  { %744 = vmatpush1.bf16.msra.mxu0 %v1076_v54  ;;  %v1159_v54 = vld [vmem:[#allocation3 + $0x1f4] ss:$8 sps:$4 sm:$0xff]  }
  0x47   :  { %745 = vmatprep.subr.bf16.mxu0 %v1084_v55  ;;  %v1157_v55 = vld [vmem:[#allocation3 + $0x1f0] ss:$8 sps:$4 sm:$0xff]  }
  0x4a   :  { %746 = vmatpush1.bf16.msra.mxu0 %v1082_v56  ;;  %v175_v56 = vlaneseq }
  0x4b   :  { %747 = vmatprep.subr.bf16.mxu0 %v1090_v57 }
  0x4c   :  { %v1385_v57 = vshrl.u32 %v175_v56, 7 }
  0x4e   :  { %748 = vmatpush1.bf16.msra.mxu0 %v1088_v58  ;;  %v1388_v58 = vsub.s32 0, %v1385_v57 }
  0x4f   :  { %749 = vmatprep.subr.bf16.mxu0 %v1096_v59  ;;  %v173_v59 = vld [vmem:[%s1429_s4] sm:$0xf] }
  0x52   :  { %750 = vmatpush1.bf16.msra.mxu0 %v1094_v60  ;;  %v1394_v60 = vsub.s32 1, %v1385_v57 }
  0x53   :  { %751 = vmatprep.subr.bf16.mxu0 %v1102_v61  ;;  %v178_v61 = vrot.slane %v173_v59, %v1388_v58 }
  0x56   :  { %752 = vmatpush1.bf16.msra.mxu0 %v1100_v62  ;;  %v182_v62 = vrot.slane %v173_v59, %v1394_v60 }
  0x57   :  { %753 = vmatprep.subr.bf16.mxu0 %v1108_v63 }
  0x5a   :  { %754 = vmatpush1.bf16.msra.mxu0 %v1106_v0 }
  0x5b   :  { %755 = vmatprep.subr.bf16.mxu0 %v1114_v1 }
  0x5e   :  { %756 = vmatpush1.bf16.msra.mxu0 %v1112_v2  ;;  %v185_v2 = vsub.s32 2, %v1385_v57 }
  0x5f   :  { %757 = vmatprep.subr.bf16.mxu0 %v1120_v28 }
  0x62   :  { %758 = vmatpush1.bf16.msra.mxu0 %v1118_v30 }
  0x63   :  { %759 = vmatprep.subr.bf16.mxu0 %v1126_v32 }
  0xad   :  { %v160_v3 = vpop.permute.xlu0 %159 }
 0x10c   :  { %v140_v35 = vpop.f32.mrb[0].mxu0 }
 0x10d   :  { %v141_v36 = vadd.f32 %v884_v34, %v140_v35  ;;  %v1010_v37 = vpop.f32.mrb[1].mxu0  ;;  %v1124_v34 = vld [vmem:[#allocation3 + $0xb0] ss:$8 sps:$4 sm:$0xff]  }
 0x10e   :  { %v1127_v35 = vld [vmem:[#allocation3 + $0x190] ss:$8 sps:$4 sm:$0xff]   ;;  %760 = vmatpush1.bf16.msra.mxu0 %v1124_v34  ;;  %v1135_v37 = vld [vmem:[#allocation3 + $0x1a4] ss:$8 sps:$4 sm:$0xff]  }
 0x10f   :  { %v144_v38 = vmul.f32 0.5, %v141_v36  ;;  %v1132_v36 = vld [vmem:[#allocation3 + $0xc4] ss:$8 sps:$4 sm:$0xff]  }
 0x110   :  { %761 = vmatprep.subr.bf16.mxu0 %v1132_v36 }
 0x111   :  { %1162 = vtanh.f32 %v144_v38  ;;  %v1130_v38 = vld [vmem:[#allocation3 + $0xc0] ss:$8 sps:$4 sm:$0xff]  }
 0x112   :  { %762 = vmatpush1.bf16.msra.mxu0 %v1130_v38 }
 0x113   :  { %763 = vmatprep.subr.bf16.mxu0 %v1138_v40 }
 0x116   :  { %764 = vmatpush1.bf16.msra.mxu0 %v1136_v42 }
 0x11b   :  { %v1163_v44 = vpop.eup %1162 }
 0x11c   :  { %v146_v45 = vmul.f32 0.5, %v1163_v44  ;;  %v1144_v44 = vld [vmem:[#allocation3 + $0xe4] ss:$8 sps:$4 sm:$0xff]  }
 0x11d   :  { %765 = vmatprep.subr.bf16.mxu0 %v1144_v44 }
 0x11e   :  { %v147_v46 = vadd.f32 0.5, %v146_v45  ;;  %v1147_v45 = vld [vmem:[#allocation3 + $0x1c4] ss:$8 sps:$4 sm:$0xff]  }
 0x120   :  { %149 = vrot.lane.b32.xlu0 %v147_v46, %s1234_s21 }
 0x192   :  { %v150_v4 = vpop.permute.xlu0 %149 }
 0x193   :  { %v152_v5 = vsub.f32 %v147_v46, %v150_v4  ;;  %v1142_v46 = vld [vmem:[#allocation3 + $0xe0] ss:$8 sps:$4 sm:$0xff]  }
 0x194   :  { %766 = vmatpush1.bf16.msra.mxu0 %v1142_v46 }
 0x195   :  { %v162_v6 = vmul.f32 %v160_v3, %v152_v5  ;;  %767 = vmatprep.subr.bf16.mxu0 %v1150_v48  ;;  %v189_v5 = vsub.s32 3, %v1385_v57 }
 0x197   :  { %v163_v7 = vmul.f32 %v162_v6, %v1352_v27  ;;  %v1115_v27 = vld [vmem:[#allocation3 + $0x170] ss:$8 sps:$4 sm:$0xff]  }
 0x198   :  { %768 = vmatpush1.bf16.msra.mxu0 %v1148_v50 }
 0x199   :  { %v164_v9 = vpack.c.bf16 %v163_v7, %v163_v7 }
 0x19b   :  { %893 = vmatmul.mubr.msk.bf16.vlgmr.msra.gmra.mrb[0].mxu1 %vm235_vm1, %v164_v9 }
 0x19c   :  { %281 = vmatpush1.bf16.msra.mxu1 %v1058_v8  ;;  %312 = vmatprep.mubr.bf16.mxu1 %v1233_v43  ;;  %v1139_v43 = vld [vmem:[#allocation3 + $0x1b0] ss:$8 sps:$4 sm:$0xff]  }
 0x19d   :  { %282 = vmatprep.subr.bf16.mxu1 %v1063_v10  ;;  %v190_v10 = vrot.slane %v173_v59, %v189_v5 }
 0x1a0   :  { %283 = vmatpush1.bf16.msra.mxu1 %v1061_v11 }
 0x1a1   :  { %778 = vmatprep.subr.bf16.mxu1 %v1075_v12 }
 0x1a3   :  { %894 = vmatmul.mubr.msk.bf16.vlgmr.msra.gmra.mrb[4].mxu1 %vm235_vm1, %v164_v9  ;;  %v186_v9 = vrot.slane %v173_v59, %v185_v2 }
 0x1a4   :  { %779 = vmatpush1.bf16.msra.mxu1 %v1073_v13 }
 0x1a5   :  { %780 = vmatprep.subr.bf16.mxu1 %v1081_v14 }
 0x1a8   :  { %781 = vmatpush1.bf16.msra.mxu1 %v1079_v15 }
 0x1a9   :  { %782 = vmatprep.subr.bf16.mxu1 %v1087_v16 }
 0x1ac   :  { %783 = vmatpush1.bf16.msra.mxu1 %v1085_v17 }
 0x1ad   :  { %784 = vmatprep.subr.bf16.mxu1 %v1093_v18 }
 0x1b0   :  { %785 = vmatpush1.bf16.msra.mxu1 %v1091_v19 }
 0x1b1   :  { %786 = vmatprep.subr.bf16.mxu1 %v1099_v20 }
 0x1b4   :  { %787 = vmatpush1.bf16.msra.mxu1 %v1097_v21 }
 0x1b5   :  { %788 = vmatprep.subr.bf16.mxu1 %v1105_v22 }
 0x1b8   :  { %789 = vmatpush1.bf16.msra.mxu1 %v1103_v23 }
 0x1b9   :  { %790 = vmatprep.subr.bf16.mxu1 %v1111_v24 }
 0x1bc   :  { %791 = vmatpush1.bf16.msra.mxu1 %v1109_v25 }
 0x1bd   :  { %792 = vmatprep.subr.bf16.mxu1 %v1117_v26 }
 0x1c0   :  { %793 = vmatpush1.bf16.msra.mxu1 %v1115_v27 }
 0x1c1   :  { %794 = vmatprep.subr.bf16.mxu1 %v1123_v29 }
 0x1c4   :  { %795 = vmatpush1.bf16.msra.mxu1 %v1121_v31 }
 0x1c5   :  { %796 = vmatprep.subr.bf16.mxu1 %v1129_v33 }
 0x1c8   :  { %797 = vmatpush1.bf16.msra.mxu1 %v1127_v35  ;;  %v405_v35 = vld [vmem:[%s1431_s6] sm:$0x3] }
 0x1c9   :  { %798 = vmatprep.subr.bf16.mxu1 %v1135_v37 }
 0x1cc   :  { %799 = vmatpush1.bf16.msra.mxu1 %v1133_v39  ;;  %v410_v39 = vrot.slane %v405_v35, %v1388_v58 }
 0x1cd   :  { %800 = vmatprep.subr.bf16.mxu1 %v1141_v41  ;;  %v414_v41 = vrot.slane %v405_v35, %v1394_v60 }
 0x1d0   :  { %801 = vmatpush1.bf16.msra.mxu1 %v1139_v43 }
 0x1d1   :  { %802 = vmatprep.subr.bf16.mxu1 %v1147_v45 }
 0x1d4   :  { %803 = vmatpush1.bf16.msra.mxu1 %v1145_v47 }
 0x1d5   :  { %804 = vmatprep.subr.bf16.mxu1 %v1153_v49 }
 0x1d8   :  { %805 = vmatpush1.bf16.msra.mxu1 %v1151_v51 }
 0x1d9   :  { %806 = vmatprep.subr.bf16.mxu1 %v1156_v52  ;;  %v827_v52 = vld [vmem:[%s1432_s7] sm:$0x3]  ;;  %s1235_s7 = smov [#allocation6]  }
 0x1da   :  { %v832_v59 = vrot.slane %v827_v52, %v1388_v58  ;;  %s875_s30 = sshll.u32 %s1235_s7, 4  ;;  %s876_s30 = int_to_ptr.vmem [resolvable:$true] %s875_s30 }
 0x1db   :  { %s1200_s10 = scalar_lea.vmem %s876_s30, 16  ;;  %s1204_s11 = scalar_lea.vmem %s876_s30, 32 }
 0x1dc   :  { %807 = vmatpush1.bf16.msra.mxu1 %v1154_v53  ;;  %p1201_p8 = scmp.ne.s32.totalorder %s876_s30, %s1200_s10  ;;  %p1205_p9 = scmp.lt.s32.totalorder %s876_s30, %s876_s30 }
 0x1dd   :  { %808 = vmatprep.subr.bf16.mxu1 %v1159_v54  ;;  %p1206_p10 = scmp.lt.s32.totalorder %s1204_s11, %s1200_s10 }
 0x1df   :  { %p1207_p11 = por %p1206_p10, %p1205_p9 }
 0x1e0   :  { %809 = vmatpush1.bf16.msra.mxu1 %v1157_v55 }
 0x1e1   :  { %p1208_p12 = pnand %p1207_p11, %p1201_p8 }
 0x26e   :  { %v273_v63 = vpop.f32.mrb[0].mxu1 }
 0x26f   :  { %v274_v0 = vadd.f32 %v273_v63, %v178_v61  ;;  %v275_v1 = vpop.f32.mrb[1].mxu1 }
 0x270   :  { %v276_v3 = vadd.f32 %v275_v1, %v182_v62  ;;  %v277_v4 = vpop.f32.mrb[2].mxu1  ;;  %v836_v62 = vrot.slane %v827_v52, %v1394_v60 }
 0x271   :  { %v321_v6 = vmul.f32 0.5, %v274_v0  ;;  %v278_v7 = vpop.f32.mrb[3].mxu1  ;;  %v844_v4 = vld [vmem:[#allocation2] sm:$0x1] }
 0x272   :  { %v322_v8 = vmul.f32 0.5, %v276_v3 }
 0x273   :  { %1164 = vtanh.f32 %v321_v6 }
 0x274   :  { %1166 = vtanh.f32 %v322_v8 }
 0x276   :  { %v314_v11 = vpop.f32.mrb[4].mxu1 }
 0x277   :  { %v315_v12 = vadd.f32 %v314_v11, %v186_v9  ;;  %v316_v13 = vpop.f32.mrb[5].mxu1 }
 0x278   :  { %v317_v14 = vadd.f32 %v316_v13, %v190_v10  ;;  %v318_v15 = vpop.f32.mrb[6].mxu1  ;;  %v861_v10 = vand.u32 127, %v175_v56 }
 0x279   :  { %v323_v16 = vmul.f32 0.5, %v315_v12  ;;  %v319_v17 = vpop.f32.mrb[7].mxu1 }
 0x27a   :  { %v324_v18 = vmul.f32 0.5, %v317_v14  ;;  %v864_v60 = vsub.s32 %v861_v10, %v1385_v57 }
 0x27b   :  { %1168 = vtanh.f32 %v323_v16 }
 0x27c   :  { %1170 = vtanh.f32 %v324_v18 }
 0x27d   :  { %v1165_v19 = vpop.eup %1164 }
 0x27e   :  { %v1167_v20 = vpop.eup %1166  ;;  %v329_v21 = vmul.f32 0.5, %v1165_v19 }
 0x27f   :  { %v330_v22 = vmul.f32 0.5, %v1167_v20 }
 0x280   :  { %v333_v23 = vadd.f32 0.5, %v329_v21 }
 0x281   :  { %v334_v24 = vadd.f32 0.5, %v330_v22 }
 0x282   :  { %v337_v26 = vpack.c.bf16 %v333_v23, %v333_v23 }
 0x283   :  { %v338_v25 = vpack.c.bf16 %v334_v24, %v334_v24 }
 0x285   :  { %v1169_v27 = vpop.eup %1168  ;;  %769 = vmatprep.mubr.bf16.mxu0 %v338_v25 }
 0x286   :  { %v1171_v28 = vpop.eup %1170  ;;  %v331_v29 = vmul.f32 0.5, %v1169_v27  ;;  %770 = vmatmul.mubr.bf16.vlgmr.msra.gmra.mrb[4].mxu0 %v337_v26 }
 0x287   :  { %v332_v30 = vmul.f32 0.5, %v1171_v28 }
 0x288   :  { %v335_v31 = vadd.f32 0.5, %v331_v29 }
 0x289   :  { %v336_v32 = vadd.f32 0.5, %v332_v30 }
 0x28a   :  { %v339_v34 = vpack.c.bf16 %v335_v31, %v335_v31 }
 0x28b   :  { %v340_v33 = vpack.c.bf16 %v336_v32, %v336_v32 }
 0x28d   :  { %810 = vmatprep.mubr.bf16.mxu1 %v340_v33 }
 0x28e   :  { %811 = vmatmul.mubr.bf16.vlgmr.msra.gmra.mrb[8].mxu1 %v339_v34 }
 0x359   :  { %v771_v36 = vpop.f32.mrb[4].mxu0 }
 0x35a   :  { %v773_v37 = vpop.f32.mrb[5].mxu0  ;;  %v772_v42 = vadd.f32 %v771_v36, %v410_v39 }
 0x35b   :  { %v775_v38 = vpop.f32.mrb[6].mxu0  ;;  %v774_v43 = vadd.f32 %v773_v37, %v414_v41 }
 0x35c   :  { %v776_v40 = vpop.f32.mrb[7].mxu0 }
 0x361   :  { %v812_v44 = vpop.f32.mrb[8].mxu1 }
 0x362   :  { %v813_v45 = vadd.f32 %v812_v44, %v772_v42  ;;  %v814_v46 = vpop.f32.mrb[9].mxu1 }
 0x363   :  { %v815_v47 = vadd.f32 %v814_v46, %v774_v43  ;;  %v816_v48 = vpop.f32.mrb[10].mxu1 }
 0x364   :  { %v819_v49 = vmul.f32 0.5, %v813_v45  ;;  %v817_v50 = vpop.f32.mrb[11].mxu1 }
 0x365   :  { %v820_v51 = vmul.f32 0.5, %v815_v47 }
 0x366   :  { %1172 = vtanh.f32 %v819_v49 }
 0x367   :  { %1174 = vtanh.f32 %v820_v51 }
 0x370   :  { %v1173_v53 = vpop.eup %1172 }
 0x371   :  { %v1175_v54 = vpop.eup %1174  ;;  %v823_v55 = vmul.f32 0.5, %v1173_v53 }
 0x372   :  { %v824_v61 = vmul.f32 0.5, %v1175_v54 }
 0x373   :  { %v825_v63 = vadd.f32 0.5, %v823_v55 }
 0x374   :  { %v826_v0 = vadd.f32 0.5, %v824_v61 }
 0x375   :  { %v839_v1 = vmul.f32 %v832_v59, %v825_v63 }
 0x376   :  { %v840_v2 = vmul.f32 %v836_v62, %v826_v0 }
 0x378   :  { %v841_v3 = vadd.f32 %v840_v2, %v839_v1 }
 0x37a   :  { %842 = vadd.xlane.f32.xlu1 %v841_v3 }
 0x38b   :  { %847 = vperm.xlu1 %1050, %v844_v4  }
 0x407   :  { %v843_v5 = vpop.xlane.xlu1 %842 }
 0x40b   :  { %v848_v6 = vpop.permute.xlu1 %847 }
 0x40c   :  { %v853_v7 = vrot.slane %v848_v6, %v1388_v58 }
 0x40e   :  { %v854_v8 = vadd.f32 %v853_v7, %v843_v5 }
 0x410   :  { %v855_v9 = vmul.f32 0.5, %v854_v8 }
 0x412   :  { %1176 = vtanh.f32 %v855_v9 }
 0x41c   :  { %v1177_v11 = vpop.eup %1176 }
 0x41d   :  { %v857_v12 = vmul.f32 0.5, %v1177_v11 }
 0x41f   :  { %v858_v13 = vadd.f32 0.5, %v857_v12 }
 0x421   :  { %v865_v14 = vrot.slane %v858_v13, %v864_v60 }
 0x423   :  { %868 = vst.msk [vmem:[#allocation6] sm:$0x1] %vm867_vm2, %v865_v14 }
 0x424   :  { %1211 = shalt.err (!%p1208_p12)
}
 0x425   :  { %s1212_s13 = scalar_lea.hbm %s1434_s9, 16 }
 0x426   :  { %p1213_p13 = scmp.ne.s32.totalorder %s1434_s9, %s1212_s13  ;;  %p1216_p0 = scmp.lt.u32.totalorder %s1212_s13, %s1434_s9 }
 0x428   :  { %p1218_p1 = pnand %p1216_p0, %p1213_p13 }
 0x42a   :  { %1221 = shalt.err (!%p1218_p1)
}
 0x42b   :  { %878 = dma.vmem_to_hbm [thread:$0]  %s876_s30, 16, %s1434_s9, [#allocation5]  }
 0x42c   :  { %1224 = dma.done.wait [#allocation5], 16  }
 0x42d   :  { %1225 = vsyncadd [#allocation5], 4294967280 }
 0x42e   :  { %882 = vsyncpa [#allocation4], 1 }
 0x42f   :  { %883 = vsyncpa [#allocation5], 1 }

</bundles_post_ra>
